<compile_context>
chip_gen: v7x
topology: tpu7x:2x2x1
jax: 0.10.0
libtpu: 0.0.40
codegen_flags: <defaults>
</compile_context>

<pallas_src>
import functools

import numpy as np
import jax
import jax.numpy as jnp
from jax import lax
from jax.experimental import pallas as pl
from jax.experimental.pallas import tpu as pltpu

_BN_EPS = 1e-5
_KSIZES = (3, 5, 7)
# Branch -> (first BN, second BN); branch 3 uses bn2 twice, exactly as in the PyTorch code.
_BN_MAP = (("bn1", "bn2"), ("bn1", "bn2"), ("bn2", "bn2"))
_KMAX = max(_KSIZES)          # 7
_HALO = (_KMAX - 1) // 2      # 3


# ---------------------------------------------------------------------------
# Fused kernel (transposed / lane-dense orientation; all intermediates (C, B*L)):
#   conv1(+folded BN)+ReLU -> conv2(+folded BN)+ReLU -> fc1, no scratch buffers.
# ---------------------------------------------------------------------------
def _fused_kernel(x_ref, m_ref, w1_ref, sh1_ref, w2_ref, sh2_ref,
                  wfc_ref, bfc_ref, o_ref, *, halo):
    bl = x_ref.shape[-1]              # B*L (= 128, lane-dense)
    kmax = 2 * halo + 1

    def conv_taps(src, w_ref):
        """sum_d  W^T[d] @ (tap-d shifted, boundary-masked src)   -> (C_out, B*L)."""
        acc = None
        for d in range(kmax):                                   # static unroll (7 taps)
            if d == halo:
                opnd = src                                      # center tap: no shift
            else:
                opnd = pltpu.roll(src, (halo - d) % bl, axis=1) * m_ref[d:d + 1, :]
            c = jnp.dot(w_ref[d], opnd, preferred_element_type=jnp.float32)
            acc = c if acc is None else acc + c
        return acc

    x = x_ref[...]                                                  # (Cin_pad, B*L)
    h1 = jnp.maximum(conv_taps(x, w1_ref) + sh1_ref[...], 0.0)     # (C3, B*L)
    h2 = jnp.maximum(conv_taps(h1, w2_ref) + sh2_ref[...], 0.0)    # (C3, B*L)
    # fc1 for all batch elements at once (block-structured, lane-dense output).
    o_ref[...] = jnp.dot(h2, wfc_ref[...],
                         preferred_element_type=jnp.float32) + bfc_ref[...]


# ---------------------------------------------------------------------------
# One-time host-side weight prepacking (BN folds, tap expansion, fc block weight,
# boundary masks, regularization scalar).  Runs once, NOT per forward call.
# ---------------------------------------------------------------------------
def prepack_params(params, batch, seq_len):
    cout = params["conv1_1_w"].shape[0]
    cin = params["conv1_1_w"].shape[1]
    c3 = 3 * cout
    nc = params["fc1_w"].shape[0]
    bl = batch * seq_len
    cin_pad = -(-cin // 8) * 8                      # sublane-align the tiny input channel dim
    assert batch * nc <= bl, "fc output packing assumes num_classes <= sequence_length"

    w1t = np.zeros((_KMAX, c3, cin_pad), np.float32)     # per-tap (C3, Cin) with BN scale folded
    w2t = np.zeros((_KMAX, c3, c3), np.float32)          # per-tap branch-block-diagonal (C3, C3)
    sh1 = np.zeros((c3, 1), np.float32)
    sh2 = np.zeros((c3, 1), np.float32)
    reg = 0.0
    for i, (K, (bn_a, bn_b)) in enumerate(zip(_KSIZES, _BN_MAP), start=1):
        off = (_KMAX - K) // 2                            # center-tap alignment
        cs = slice((i - 1) * cout, i * cout)
        wa = np.asarray(params[f"conv{i}_1_w"], np.float32)   # (Cout, Cin, K)
        wb = np.asarray(params[f"conv{i}_2_w"], np.float32)   # (Cout, Cout, K)
        ba = np.asarray(params[f"conv{i}_1_b"], np.float32)
        bb = np.asarray(params[f"conv{i}_2_b"], np.float32)
        pa, pb = params[bn_a], params[bn_b]
        sa = np.asarray(pa["gamma"]) / np.sqrt(np.asarray(pa["var"]) + _BN_EPS)
        sb = np.asarray(pb["gamma"]) / np.sqrt(np.asarray(pb["var"]) + _BN_EPS)
        for k in range(K):
            w1t[off + k, cs, :cin] = sa[:, None] * wa[:, :, k]
            w2t[off + k, cs, cs] = sb[:, None] * wb[:, :, k]
        sh1[cs, 0] = (ba - np.asarray(pa["mean"])) * sa + np.asarray(pa["beta"])
        sh2[cs, 0] = (bb - np.asarray(pb["mean"])) * sb + np.asarray(pb["beta"])
        reg += float(np.sum(wa ** 2) + np.sum(wb ** 2))

    # Tap-shift boundary masks: column m = b*L + l is valid for tap d iff 0 <= l + d - halo < L.
    pos = np.arange(bl) % seq_len
    masks = np.stack([((pos + d - _HALO >= 0) & (pos + d - _HALO < seq_len)).astype(np.float32)
                      for d in range(_KMAX)])                        # (KMAX, B*L)

    # fc1 as one block-structured matmul with lane-dense output:
    #   out[c, b*NC + n] = sum_l h2[b, c, l] * fc_w[n, l]
    wfc = np.asarray(params["fc1_w"], np.float32)                    # (NC, L)
    bfc = np.asarray(params["fc1_b"], np.float32)
    wfct = np.zeros((bl, bl), np.float32)
    bfcr = np.zeros((1, bl), np.float32)
    for b in range(batch):
        wfct[b * seq_len:(b + 1) * seq_len, b * nc:b * nc + nc] = wfc.T
        bfcr[0, b * nc:b * nc + nc] = bfc

    packed = dict(w1t=w1t, sh1=sh1, w2t=w2t, sh2=sh2, masks=masks,
                  wfct=wfct, bfc=bfcr, reg=np.float32(reg))
    return {k: jnp.asarray(v) for k, v in packed.items()}


def multiscale_cnn_forward(packed, x_ncl, *, num_classes):
    """x_ncl: (B, C_in, L), same layout as the PyTorch module input.
    Returns (logits (B, 3*C_out, num_classes), regularization_loss)."""
    B, cin, L = x_ncl.shape
    bl = B * L
    c3 = packed["w1t"].shape[1]
    cin_pad = packed["w1t"].shape[2]

    # Tiny per-call input transform: (B, Cin, L) -> lane-dense (Cin_pad, B*L).
    x_t = jnp.transpose(x_ncl, (1, 0, 2)).reshape(cin, bl)
    x_t = jnp.pad(x_t, ((0, cin_pad - cin), (0, 0)))

    vmem = pl.BlockSpec(memory_space=pltpu.MemorySpace.VMEM)
    kernel = functools.partial(_fused_kernel, halo=_HALO)
    out_t = pl.pallas_call(
        kernel,
        out_shape=jax.ShapeDtypeStruct((c3, bl), jnp.float32),
        in_specs=[vmem] * 8,
        out_specs=vmem,
    )(x_t, packed["masks"], packed["w1t"], packed["sh1"],
      packed["w2t"], packed["sh2"], packed["wfct"], packed["bfc"])

    # out_t[c, b*NC + n] == y[b, c, n]; slice + tiny transpose back to the PyTorch layout.
    y = jnp.transpose(out_t[:, :B * num_classes].reshape(c3, B, num_classes), (1, 0, 2))

    # TODO(synk): 'learnable_linear' aggregation (permute + Linear(seq_len, 1)) is not
    # implemented; the 'mean' aggregation_method (identity in forward()) is used here.
    return y, packed["reg"]


# ---------------------------------------------------------------------------
# Parameter setup (deterministic, synthetic).
# ---------------------------------------------------------------------------
def init_params(key, c_in, c_out, seq_len, num_classes):
    keys = iter(jax.random.split(key, 32))
    p = {}
    for i, K in enumerate(_KSIZES, start=1):
        p[f"conv{i}_1_w"] = 0.1 * jax.random.normal(next(keys), (c_out, c_in, K), jnp.float32)
        p[f"conv{i}_1_b"] = 0.05 * jax.random.normal(next(keys), (c_out,), jnp.float32)
        p[f"conv{i}_2_w"] = 0.1 * jax.random.normal(next(keys), (c_out, c_out, K), jnp.float32)
        p[f"conv{i}_2_b"] = 0.05 * jax.random.normal(next(keys), (c_out,), jnp.float32)
    for name in ("bn1", "bn2"):
        p[name] = {
            "gamma": 1.0 + 0.1 * jax.random.normal(next(keys), (c_out,), jnp.float32),
            "beta": 0.1 * jax.random.normal(next(keys), (c_out,), jnp.float32),
            "mean": 0.1 * jax.random.normal(next(keys), (c_out,), jnp.float32),
            "var": 0.5 + jax.random.uniform(next(keys), (c_out,), jnp.float32),
        }
    p["fc1_w"] = 0.1 * jax.random.normal(next(keys), (num_classes, seq_len), jnp.float32)
    p["fc1_b"] = 0.05 * jax.random.normal(next(keys), (num_classes,), jnp.float32)
    return p


# ---------------------------------------------------------------------------
# Pure-JAX reference (independent of the Pallas path) for a correctness check.
# ---------------------------------------------------------------------------
def reference_forward(params, x_ncl):
    def conv(x, w, b):
        K = w.shape[-1]
        pad = (K - 1) // 2
        y = lax.conv_general_dilated(x, w, window_strides=(1,), padding=[(pad, pad)],
                                     dimension_numbers=("NCH", "OIH", "NCH"))
        return y + b[None, :, None]

    def bn(y, p):
        s = p["gamma"] / jnp.sqrt(p["var"] + _BN_EPS)
        return (y - p["mean"][None, :, None]) * s[None, :, None] + p["beta"][None, :, None]

    outs, regs = [], []
    for i, (a, b) in enumerate(_BN_MAP, start=1):
        wa, ba = params[f"conv{i}_1_w"], params[f"conv{i}_1_b"]
        wb, bb = params[f"conv{i}_2_w"], params[f"conv{i}_2_b"]
        h = jax.nn.relu(bn(conv(x_ncl, wa, ba), params[a]))
        h = jax.nn.relu(bn(conv(h, wb, bb), params[b]))
        outs.append(h)
        regs.append(jnp.sum(wa ** 2) + jnp.sum(wb ** 2))
    xc = jnp.concatenate(outs, axis=1)
    y = jnp.einsum("bcl,nl->bcn", xc, params["fc1_w"]) + params["fc1_b"]
    return y, regs[0] + regs[1] + regs[2]


if __name__ == "__main__":
    B, C_IN, SEQ_LEN = 2, 4, 64          # one-hot RNA sequence, NCL layout; B*L = 128 lanes
    C_OUT, NUM_CLASSES = 16, 8

    key = jax.random.PRNGKey(0)
    k_params, k_x = jax.random.split(key)
    params = init_params(k_params, C_IN, C_OUT, SEQ_LEN, NUM_CLASSES)
    x = jax.random.normal(k_x, (B, C_IN, SEQ_LEN), jnp.float32)

    packed = prepack_params(params, B, SEQ_LEN)          # one-time host-side packing

    fwd = jax.jit(multiscale_cnn_forward, static_argnames=("num_classes",))
    logits, reg_loss = fwd(packed, x, num_classes=NUM_CLASSES)
    jax.block_until_ready((logits, reg_loss))

    ref_logits, ref_reg = reference_forward(params, x)
    assert logits.shape == (B, 3 * C_OUT, NUM_CLASSES), logits.shape
    assert jnp.allclose(logits, ref_logits, rtol=2e-4, atol=2e-4), \
        float(jnp.max(jnp.abs(logits - ref_logits)))
    assert jnp.allclose(reg_loss, ref_reg, rtol=2e-4, atol=2e-4)

    print("KERNEL_OK")
</pallas_src>

<mosaic_0001>
module attributes {stable_mosaic.version = 11 : i64} {
  func.func @_fused_kernel(%arg0: memref<8x128xf32, #tpu.memory_space<vmem>>, %arg1: memref<7x128xf32, #tpu.memory_space<vmem>>, %arg2: memref<7x48x8xf32, #tpu.memory_space<vmem>>, %arg3: memref<48x1xf32, #tpu.memory_space<vmem>>, %arg4: memref<7x48x48xf32, #tpu.memory_space<vmem>>, %arg5: memref<48x1xf32, #tpu.memory_space<vmem>>, %arg6: memref<128x128xf32, #tpu.memory_space<vmem>>, %arg7: memref<1x128xf32, #tpu.memory_space<vmem>>, %arg8: memref<48x128xf32, #tpu.memory_space<vmem>>) attributes {dimension_semantics = [], scalar_prefetch = 0 : i64, scratch_operands = 0 : i64, tpu.core_type = #tpu.core_type<tc>} {
    %c0 = arith.constant 0 : index
    %c0_0 = arith.constant 0 : index
    %0 = vector.load %arg0[%c0, %c0_0] : memref<8x128xf32, #tpu.memory_space<vmem>>, vector<8x128xf32>
    %c3_i32 = arith.constant 3 : i32
    %1 = tpu.dynamic_rotate %0 by %c3_i32 dim 1 : vector<8x128xf32>, i32 -> vector<8x128xf32>
    %c0_1 = arith.constant 0 : index
    %c0_2 = arith.constant 0 : index
    %2 = vector.load %arg1[%c0_1, %c0_2] : memref<7x128xf32, #tpu.memory_space<vmem>>, vector<1x128xf32>
    %3 = vector.broadcast %2 : vector<1x128xf32> to vector<8x128xf32>
    %4 = arith.mulf %1, %3 : vector<8x128xf32>
    %c0_3 = arith.constant 0 : index
    %c0_4 = arith.constant 0 : index
    %c0_5 = arith.constant 0 : index
    %5 = vector.load %arg2[%c0_3, %c0_4, %c0_5] : memref<7x48x8xf32, #tpu.memory_space<vmem>>, vector<1x48x8xf32>
    %6 = vector.shape_cast %5 : vector<1x48x8xf32> to vector<48x8xf32>
    %cst = arith.constant dense<0.000000e+00> : vector<48x128xf32>
    %7 = tpu.matmul %6, %4, %cst {dimension_numbers = #tpu.dot_dimension_numbers<[1], [0], [0], [1], [0, 0, 1, 1], [], []>} : vector<48x8xf32>, vector<8x128xf32>, vector<48x128xf32> -> vector<48x128xf32>
    %c2_i32 = arith.constant 2 : i32
    %8 = tpu.dynamic_rotate %0 by %c2_i32 dim 1 : vector<8x128xf32>, i32 -> vector<8x128xf32>
    %c1 = arith.constant 1 : index
    %c0_6 = arith.constant 0 : index
    %9 = vector.load %arg1[%c1, %c0_6] : memref<7x128xf32, #tpu.memory_space<vmem>>, vector<1x128xf32>
    %10 = vector.broadcast %9 : vector<1x128xf32> to vector<8x128xf32>
    %11 = arith.mulf %8, %10 : vector<8x128xf32>
    %c1_7 = arith.constant 1 : index
    %c0_8 = arith.constant 0 : index
    %c0_9 = arith.constant 0 : index
    %12 = vector.load %arg2[%c1_7, %c0_8, %c0_9] : memref<7x48x8xf32, #tpu.memory_space<vmem>>, vector<1x48x8xf32>
    %13 = vector.shape_cast %12 : vector<1x48x8xf32> to vector<48x8xf32>
    %cst_10 = arith.constant dense<0.000000e+00> : vector<48x128xf32>
    %14 = tpu.matmul %13, %11, %cst_10 {dimension_numbers = #tpu.dot_dimension_numbers<[1], [0], [0], [1], [0, 0, 1, 1], [], []>} : vector<48x8xf32>, vector<8x128xf32>, vector<48x128xf32> -> vector<48x128xf32>
    %15 = arith.addf %7, %14 : vector<48x128xf32>
    %c1_i32 = arith.constant 1 : i32
    %16 = tpu.dynamic_rotate %0 by %c1_i32 dim 1 : vector<8x128xf32>, i32 -> vector<8x128xf32>
    %c2 = arith.constant 2 : index
    %c0_11 = arith.constant 0 : index
    %17 = vector.load %arg1[%c2, %c0_11] : memref<7x128xf32, #tpu.memory_space<vmem>>, vector<1x128xf32>
    %18 = vector.broadcast %17 : vector<1x128xf32> to vector<8x128xf32>
    %19 = arith.mulf %16, %18 : vector<8x128xf32>
    %c2_12 = arith.constant 2 : index
    %c0_13 = arith.constant 0 : index
    %c0_14 = arith.constant 0 : index
    %20 = vector.load %arg2[%c2_12, %c0_13, %c0_14] : memref<7x48x8xf32, #tpu.memory_space<vmem>>, vector<1x48x8xf32>
    %21 = vector.shape_cast %20 : vector<1x48x8xf32> to vector<48x8xf32>
    %cst_15 = arith.constant dense<0.000000e+00> : vector<48x128xf32>
    %22 = tpu.matmul %21, %19, %cst_15 {dimension_numbers = #tpu.dot_dimension_numbers<[1], [0], [0], [1], [0, 0, 1, 1], [], []>} : vector<48x8xf32>, vector<8x128xf32>, vector<48x128xf32> -> vector<48x128xf32>
    %23 = arith.addf %15, %22 : vector<48x128xf32>
    %c3 = arith.constant 3 : index
    %c0_16 = arith.constant 0 : index
    %c0_17 = arith.constant 0 : index
    %24 = vector.load %arg2[%c3, %c0_16, %c0_17] : memref<7x48x8xf32, #tpu.memory_space<vmem>>, vector<1x48x8xf32>
    %25 = vector.shape_cast %24 : vector<1x48x8xf32> to vector<48x8xf32>
    %cst_18 = arith.constant dense<0.000000e+00> : vector<48x128xf32>
    %26 = tpu.matmul %25, %0, %cst_18 {dimension_numbers = #tpu.dot_dimension_numbers<[1], [0], [0], [1], [0, 0, 1, 1], [], []>} : vector<48x8xf32>, vector<8x128xf32>, vector<48x128xf32> -> vector<48x128xf32>
    %27 = arith.addf %23, %26 : vector<48x128xf32>
    %c127_i32 = arith.constant 127 : i32
    %28 = tpu.dynamic_rotate %0 by %c127_i32 dim 1 : vector<8x128xf32>, i32 -> vector<8x128xf32>
    %c4 = arith.constant 4 : index
    %c0_19 = arith.constant 0 : index
    %29 = vector.load %arg1[%c4, %c0_19] : memref<7x128xf32, #tpu.memory_space<vmem>>, vector<1x128xf32>
    %30 = vector.broadcast %29 : vector<1x128xf32> to vector<8x128xf32>
    %31 = arith.mulf %28, %30 : vector<8x128xf32>
    %c4_20 = arith.constant 4 : index
    %c0_21 = arith.constant 0 : index
    %c0_22 = arith.constant 0 : index
    %32 = vector.load %arg2[%c4_20, %c0_21, %c0_22] : memref<7x48x8xf32, #tpu.memory_space<vmem>>, vector<1x48x8xf32>
    %33 = vector.shape_cast %32 : vector<1x48x8xf32> to vector<48x8xf32>
    %cst_23 = arith.constant dense<0.000000e+00> : vector<48x128xf32>
    %34 = tpu.matmul %33, %31, %cst_23 {dimension_numbers = #tpu.dot_dimension_numbers<[1], [0], [0], [1], [0, 0, 1, 1], [], []>} : vector<48x8xf32>, vector<8x128xf32>, vector<48x128xf32> -> vector<48x128xf32>
    %35 = arith.addf %27, %34 : vector<48x128xf32>
    %c126_i32 = arith.constant 126 : i32
    %36 = tpu.dynamic_rotate %0 by %c126_i32 dim 1 : vector<8x128xf32>, i32 -> vector<8x128xf32>
    %c5 = arith.constant 5 : index
    %c0_24 = arith.constant 0 : index
    %37 = vector.load %arg1[%c5, %c0_24] : memref<7x128xf32, #tpu.memory_space<vmem>>, vector<1x128xf32>
    %38 = vector.broadcast %37 : vector<1x128xf32> to vector<8x128xf32>
    %39 = arith.mulf %36, %38 : vector<8x128xf32>
    %c5_25 = arith.constant 5 : index
    %c0_26 = arith.constant 0 : index
    %c0_27 = arith.constant 0 : index
    %40 = vector.load %arg2[%c5_25, %c0_26, %c0_27] : memref<7x48x8xf32, #tpu.memory_space<vmem>>, vector<1x48x8xf32>
    %41 = vector.shape_cast %40 : vector<1x48x8xf32> to vector<48x8xf32>
    %cst_28 = arith.constant dense<0.000000e+00> : vector<48x128xf32>
    %42 = tpu.matmul %41, %39, %cst_28 {dimension_numbers = #tpu.dot_dimension_numbers<[1], [0], [0], [1], [0, 0, 1, 1], [], []>} : vector<48x8xf32>, vector<8x128xf32>, vector<48x128xf32> -> vector<48x128xf32>
    %43 = arith.addf %35, %42 : vector<48x128xf32>
    %c125_i32 = arith.constant 125 : i32
    %44 = tpu.dynamic_rotate %0 by %c125_i32 dim 1 : vector<8x128xf32>, i32 -> vector<8x128xf32>
    %c6 = arith.constant 6 : index
    %c0_29 = arith.constant 0 : index
    %45 = vector.load %arg1[%c6, %c0_29] : memref<7x128xf32, #tpu.memory_space<vmem>>, vector<1x128xf32>
    %46 = vector.broadcast %45 : vector<1x128xf32> to vector<8x128xf32>
    %47 = arith.mulf %44, %46 : vector<8x128xf32>
    %c6_30 = arith.constant 6 : index
    %c0_31 = arith.constant 0 : index
    %c0_32 = arith.constant 0 : index
    %48 = vector.load %arg2[%c6_30, %c0_31, %c0_32] : memref<7x48x8xf32, #tpu.memory_space<vmem>>, vector<1x48x8xf32>
    %49 = vector.shape_cast %48 : vector<1x48x8xf32> to vector<48x8xf32>
    %cst_33 = arith.constant dense<0.000000e+00> : vector<48x128xf32>
    %50 = tpu.matmul %49, %47, %cst_33 {dimension_numbers = #tpu.dot_dimension_numbers<[1], [0], [0], [1], [0, 0, 1, 1], [], []>} : vector<48x8xf32>, vector<8x128xf32>, vector<48x128xf32> -> vector<48x128xf32>
    %51 = arith.addf %43, %50 : vector<48x128xf32>
    %c0_34 = arith.constant 0 : index
    %c0_35 = arith.constant 0 : index
    %52 = vector.load %arg3[%c0_34, %c0_35] : memref<48x1xf32, #tpu.memory_space<vmem>>, vector<48x1xf32>
    %53 = vector.broadcast %52 : vector<48x1xf32> to vector<48x128xf32>
    %54 = arith.addf %51, %53 : vector<48x128xf32>
    %cst_36 = arith.constant 0.000000e+00 : f32
    %55 = vector.broadcast %cst_36 : f32 to vector<48x128xf32>
    %56 = arith.maximumf %54, %55 : vector<48x128xf32>
    %c3_i32_37 = arith.constant 3 : i32
    %57 = tpu.dynamic_rotate %56 by %c3_i32_37 dim 1 : vector<48x128xf32>, i32 -> vector<48x128xf32>
    %c0_38 = arith.constant 0 : index
    %c0_39 = arith.constant 0 : index
    %58 = vector.load %arg1[%c0_38, %c0_39] : memref<7x128xf32, #tpu.memory_space<vmem>>, vector<1x128xf32>
    %59 = vector.broadcast %58 : vector<1x128xf32> to vector<48x128xf32>
    %60 = arith.mulf %57, %59 : vector<48x128xf32>
    %c0_40 = arith.constant 0 : index
    %c0_41 = arith.constant 0 : index
    %c0_42 = arith.constant 0 : index
    %61 = vector.load %arg4[%c0_40, %c0_41, %c0_42] : memref<7x48x48xf32, #tpu.memory_space<vmem>>, vector<1x48x48xf32>
    %62 = vector.shape_cast %61 : vector<1x48x48xf32> to vector<48x48xf32>
    %cst_43 = arith.constant dense<0.000000e+00> : vector<48x128xf32>
    %63 = tpu.matmul %62, %60, %cst_43 {dimension_numbers = #tpu.dot_dimension_numbers<[1], [0], [0], [1], [0, 0, 1, 1], [], []>} : vector<48x48xf32>, vector<48x128xf32>, vector<48x128xf32> -> vector<48x128xf32>
    %c2_i32_44 = arith.constant 2 : i32
    %64 = tpu.dynamic_rotate %56 by %c2_i32_44 dim 1 : vector<48x128xf32>, i32 -> vector<48x128xf32>
    %c1_45 = arith.constant 1 : index
    %c0_46 = arith.constant 0 : index
    %65 = vector.load %arg1[%c1_45, %c0_46] : memref<7x128xf32, #tpu.memory_space<vmem>>, vector<1x128xf32>
    %66 = vector.broadcast %65 : vector<1x128xf32> to vector<48x128xf32>
    %67 = arith.mulf %64, %66 : vector<48x128xf32>
    %c1_47 = arith.constant 1 : index
    %c0_48 = arith.constant 0 : index
    %c0_49 = arith.constant 0 : index
    %68 = vector.load %arg4[%c1_47, %c0_48, %c0_49] : memref<7x48x48xf32, #tpu.memory_space<vmem>>, vector<1x48x48xf32>
    %69 = vector.shape_cast %68 : vector<1x48x48xf32> to vector<48x48xf32>
    %cst_50 = arith.constant dense<0.000000e+00> : vector<48x128xf32>
    %70 = tpu.matmul %69, %67, %cst_50 {dimension_numbers = #tpu.dot_dimension_numbers<[1], [0], [0], [1], [0, 0, 1, 1], [], []>} : vector<48x48xf32>, vector<48x128xf32>, vector<48x128xf32> -> vector<48x128xf32>
    %71 = arith.addf %63, %70 : vector<48x128xf32>
    %c1_i32_51 = arith.constant 1 : i32
    %72 = tpu.dynamic_rotate %56 by %c1_i32_51 dim 1 : vector<48x128xf32>, i32 -> vector<48x128xf32>
    %c2_52 = arith.constant 2 : index
    %c0_53 = arith.constant 0 : index
    %73 = vector.load %arg1[%c2_52, %c0_53] : memref<7x128xf32, #tpu.memory_space<vmem>>, vector<1x128xf32>
    %74 = vector.broadcast %73 : vector<1x128xf32> to vector<48x128xf32>
    %75 = arith.mulf %72, %74 : vector<48x128xf32>
    %c2_54 = arith.constant 2 : index
    %c0_55 = arith.constant 0 : index
    %c0_56 = arith.constant 0 : index
    %76 = vector.load %arg4[%c2_54, %c0_55, %c0_56] : memref<7x48x48xf32, #tpu.memory_space<vmem>>, vector<1x48x48xf32>
    %77 = vector.shape_cast %76 : vector<1x48x48xf32> to vector<48x48xf32>
    %cst_57 = arith.constant dense<0.000000e+00> : vector<48x128xf32>
    %78 = tpu.matmul %77, %75, %cst_57 {dimension_numbers = #tpu.dot_dimension_numbers<[1], [0], [0], [1], [0, 0, 1, 1], [], []>} : vector<48x48xf32>, vector<48x128xf32>, vector<48x128xf32> -> vector<48x128xf32>
    %79 = arith.addf %71, %78 : vector<48x128xf32>
    %c3_58 = arith.constant 3 : index
    %c0_59 = arith.constant 0 : index
    %c0_60 = arith.constant 0 : index
    %80 = vector.load %arg4[%c3_58, %c0_59, %c0_60] : memref<7x48x48xf32, #tpu.memory_space<vmem>>, vector<1x48x48xf32>
    %81 = vector.shape_cast %80 : vector<1x48x48xf32> to vector<48x48xf32>
    %cst_61 = arith.constant dense<0.000000e+00> : vector<48x128xf32>
    %82 = tpu.matmul %81, %56, %cst_61 {dimension_numbers = #tpu.dot_dimension_numbers<[1], [0], [0], [1], [0, 0, 1, 1], [], []>} : vector<48x48xf32>, vector<48x128xf32>, vector<48x128xf32> -> vector<48x128xf32>
    %83 = arith.addf %79, %82 : vector<48x128xf32>
    %c127_i32_62 = arith.constant 127 : i32
    %84 = tpu.dynamic_rotate %56 by %c127_i32_62 dim 1 : vector<48x128xf32>, i32 -> vector<48x128xf32>
    %c4_63 = arith.constant 4 : index
    %c0_64 = arith.constant 0 : index
    %85 = vector.load %arg1[%c4_63, %c0_64] : memref<7x128xf32, #tpu.memory_space<vmem>>, vector<1x128xf32>
    %86 = vector.broadcast %85 : vector<1x128xf32> to vector<48x128xf32>
    %87 = arith.mulf %84, %86 : vector<48x128xf32>
    %c4_65 = arith.constant 4 : index
    %c0_66 = arith.constant 0 : index
    %c0_67 = arith.constant 0 : index
    %88 = vector.load %arg4[%c4_65, %c0_66, %c0_67] : memref<7x48x48xf32, #tpu.memory_space<vmem>>, vector<1x48x48xf32>
    %89 = vector.shape_cast %88 : vector<1x48x48xf32> to vector<48x48xf32>
    %cst_68 = arith.constant dense<0.000000e+00> : vector<48x128xf32>
    %90 = tpu.matmul %89, %87, %cst_68 {dimension_numbers = #tpu.dot_dimension_numbers<[1], [0], [0], [1], [0, 0, 1, 1], [], []>} : vector<48x48xf32>, vector<48x128xf32>, vector<48x128xf32> -> vector<48x128xf32>
    %91 = arith.addf %83, %90 : vector<48x128xf32>
    %c126_i32_69 = arith.constant 126 : i32
    %92 = tpu.dynamic_rotate %56 by %c126_i32_69 dim 1 : vector<48x128xf32>, i32 -> vector<48x128xf32>
    %c5_70 = arith.constant 5 : index
    %c0_71 = arith.constant 0 : index
    %93 = vector.load %arg1[%c5_70, %c0_71] : memref<7x128xf32, #tpu.memory_space<vmem>>, vector<1x128xf32>
    %94 = vector.broadcast %93 : vector<1x128xf32> to vector<48x128xf32>
    %95 = arith.mulf %92, %94 : vector<48x128xf32>
    %c5_72 = arith.constant 5 : index
    %c0_73 = arith.constant 0 : index
    %c0_74 = arith.constant 0 : index
    %96 = vector.load %arg4[%c5_72, %c0_73, %c0_74] : memref<7x48x48xf32, #tpu.memory_space<vmem>>, vector<1x48x48xf32>
    %97 = vector.shape_cast %96 : vector<1x48x48xf32> to vector<48x48xf32>
    %cst_75 = arith.constant dense<0.000000e+00> : vector<48x128xf32>
    %98 = tpu.matmul %97, %95, %cst_75 {dimension_numbers = #tpu.dot_dimension_numbers<[1], [0], [0], [1], [0, 0, 1, 1], [], []>} : vector<48x48xf32>, vector<48x128xf32>, vector<48x128xf32> -> vector<48x128xf32>
    %99 = arith.addf %91, %98 : vector<48x128xf32>
    %c125_i32_76 = arith.constant 125 : i32
    %100 = tpu.dynamic_rotate %56 by %c125_i32_76 dim 1 : vector<48x128xf32>, i32 -> vector<48x128xf32>
    %c6_77 = arith.constant 6 : index
    %c0_78 = arith.constant 0 : index
    %101 = vector.load %arg1[%c6_77, %c0_78] : memref<7x128xf32, #tpu.memory_space<vmem>>, vector<1x128xf32>
    %102 = vector.broadcast %101 : vector<1x128xf32> to vector<48x128xf32>
    %103 = arith.mulf %100, %102 : vector<48x128xf32>
    %c6_79 = arith.constant 6 : index
    %c0_80 = arith.constant 0 : index
    %c0_81 = arith.constant 0 : index
    %104 = vector.load %arg4[%c6_79, %c0_80, %c0_81] : memref<7x48x48xf32, #tpu.memory_space<vmem>>, vector<1x48x48xf32>
    %105 = vector.shape_cast %104 : vector<1x48x48xf32> to vector<48x48xf32>
    %cst_82 = arith.constant dense<0.000000e+00> : vector<48x128xf32>
    %106 = tpu.matmul %105, %103, %cst_82 {dimension_numbers = #tpu.dot_dimension_numbers<[1], [0], [0], [1], [0, 0, 1, 1], [], []>} : vector<48x48xf32>, vector<48x128xf32>, vector<48x128xf32> -> vector<48x128xf32>
    %107 = arith.addf %99, %106 : vector<48x128xf32>
    %c0_83 = arith.constant 0 : index
    %c0_84 = arith.constant 0 : index
    %108 = vector.load %arg5[%c0_83, %c0_84] : memref<48x1xf32, #tpu.memory_space<vmem>>, vector<48x1xf32>
    %109 = vector.broadcast %108 : vector<48x1xf32> to vector<48x128xf32>
    %110 = arith.addf %107, %109 : vector<48x128xf32>
    %cst_85 = arith.constant 0.000000e+00 : f32
    %111 = vector.broadcast %cst_85 : f32 to vector<48x128xf32>
    %112 = arith.maximumf %110, %111 : vector<48x128xf32>
    %c0_86 = arith.constant 0 : index
    %c0_87 = arith.constant 0 : index
    %113 = vector.load %arg6[%c0_86, %c0_87] : memref<128x128xf32, #tpu.memory_space<vmem>>, vector<128x128xf32>
    %cst_88 = arith.constant dense<0.000000e+00> : vector<48x128xf32>
    %114 = tpu.matmul %112, %113, %cst_88 {dimension_numbers = #tpu.dot_dimension_numbers<[1], [0], [0], [1], [0, 0, 1, 1], [], []>} : vector<48x128xf32>, vector<128x128xf32>, vector<48x128xf32> -> vector<48x128xf32>
    %c0_89 = arith.constant 0 : index
    %c0_90 = arith.constant 0 : index
    %115 = vector.load %arg7[%c0_89, %c0_90] : memref<1x128xf32, #tpu.memory_space<vmem>>, vector<1x128xf32>
    %116 = vector.broadcast %115 : vector<1x128xf32> to vector<48x128xf32>
    %117 = arith.addf %114, %116 : vector<48x128xf32>
    %c0_91 = arith.constant 0 : index
    %c0_92 = arith.constant 0 : index
    %118 = vector.load %arg8[%c0_91, %c0_92] : memref<48x128xf32, #tpu.memory_space<vmem>>, vector<48x128xf32>
    tpu.vector_store %arg8[%c0_91, %c0_92], %117 {strides = array<i32>} : memref<48x128xf32, #tpu.memory_space<vmem>>, vector<48x128xf32>,
    return
  }
}

</mosaic_0001>

<bundles_post_ra>
// kernel: multiscale_cnn_forward.1
= control target key start
LH: loop header
LB: loop body
LE: loop exit
PB: predicated region body
PF: predicated region fallthrough
CT: control target
= control target key end

     0   :  { %vm59_vm0 = vcmask 64512   ;;  %s2930_s9 = smov 3   ;;  %s2931_s10 = smov 127   ;;  %v2936_v3 = vmov 0   ;;  %vm1045_vm1 = vcmask 392192   ;;  %s3562_s0 = inlined_call_operand.vmem [shape: f32[8,128], index: 0, kind: input, shape index: {}]   ;;  %s3563_s2 = inlined_call_operand.vmem [shape: f32[7,48,8], index: 2, kind: input, shape index: {}]   ;;  %s3564_s3 = inlined_call_operand.vmem [shape: f32[48,1], index: 3, kind: input, shape index: {}]   ;;  %s3565_s1 = inlined_call_operand.vmem [shape: f32[7,128], index: 1, kind: input, shape index: {}]   ;;  %s3566_s4 = inlined_call_operand.vmem [shape: f32[7,48,48], index: 4, kind: input, shape index: {}]   ;;  %s3567_s5 = inlined_call_operand.vmem [shape: f32[48,1], index: 5, kind: input, shape index: {}]   ;;  %s3568_s6 = inlined_call_operand.vmem [shape: f32[128,128], index: 6, kind: input, shape index: {}]   ;;  %s3569_s7 = inlined_call_operand.vmem [shape: f32[1,128], index: 7, kind: input, shape index: {}]   ;;  %s3570_s8 = inlined_call_operand.vmem [shape: f32[48,128], index: 8, kind: output, shape index: {}]  }
   0x1   :  { %v2985_v0 = vld [vmem:[%s3562_s0] sm:$0xff]  ;;  %s2932_s11 = smov 1   ;;  %s2933_s0 = smov 126   ;;  %v2152_v2 = vld [vmem:[%s3563_s2 + $0x30] sm:$0xff]  ;;  %2929 = vset.pattern.permute.xlu1 %v2936_v3  ;;  %2928 = vset.pattern.permute.xlu0 %v2936_v3  ;;  %v949_v4 = vld [vmem:[%s3564_s3 + $0x8] sm:$0xff] }
   0x2   :  { %v38_v1 = vld [vmem:[%s3563_s2] sm:$0xff]  ;;  %30 = vrot.lane.b32.xlu0 %v2985_v0, %s2930_s9  ;;  %546 = vrot.lane.b32.xlu1 %v2985_v0, %s2931_s10  ;;  %s2934_s12 = smov 125   ;;  %s2935_s13 = smov 2   ;;  %v950_v6 = vld [vmem:[%s3564_s3 + $0x10] sm:$0xff] }
   0x3   :  { %2481 = vmatprep.mubr.msk.f32.mxu0 %vm59_vm0, %v38_v1  ;;  %2470 = vmatprep.mubr.msk.f32.mxu1 %vm59_vm0, %v2152_v2  ;;  %v948_v5 = vld [vmem:[%s3564_s3] sm:$0xff]  ;;  %v951_v7 = vld [vmem:[%s3564_s3 + $0x18] sm:$0xff]  ;;  %v953_v9 = vld [vmem:[%s3564_s3 + $0x28] sm:$0xff] }
   0x4   :  { %v952_v8 = vld [vmem:[%s3564_s3 + $0x20] sm:$0xff]  ;;  %v39_v14 = vld [vmem:[%s3563_s2 + $0x8] sm:$0xff]  ;;  %v40_v15 = vld [vmem:[%s3563_s2 + $0x10] sm:$0xff] }
   0x5   :  { %v3028_v10 = vld [vmem:[%s3565_s1] ss:$0 sm:$0xff]  ;;  %v3034_v13 = vld [vmem:[%s3565_s1 + $0x2] ss:$0 sm:$0xff]  ;;  %v41_v18 = vld [vmem:[%s3563_s2 + $0x18] sm:$0xff] }
   0x6   :  { %286 = vrot.lane.b32.xlu0 %v2985_v0, %s2932_s11  ;;  %680 = vrot.lane.b32.xlu1 %v2985_v0, %s2933_s0  ;;  %v3051_v19 = vld [vmem:[%s3565_s1 + $0x1] ss:$0 sm:$0xff]  ;;  %v43_v23 = vld [vmem:[%s3563_s2 + $0x28] sm:$0xff] }
   0x7   :  { %v42_v20 = vld [vmem:[%s3563_s2 + $0x20] sm:$0xff]  ;;  %v2153_v24 = vld [vmem:[%s3563_s2 + $0x38] sm:$0xff]  ;;  %v2172_v29 = vld [vmem:[%s3563_s2 + $0x68] sm:$0xff] }
   0x8   :  { %v2171_v25 = vld [vmem:[%s3563_s2 + $0x60] sm:$0xff]  ;;  %v2155_v30 = vld [vmem:[%s3563_s2 + $0x48] sm:$0xff]  ;;  %v2173_v31 = vld [vmem:[%s3563_s2 + $0x70] sm:$0xff] }
   0x9   :  { %v2154_v26 = vld [vmem:[%s3563_s2 + $0x40] sm:$0xff]  ;;  %v2156_v33 = vld [vmem:[%s3563_s2 + $0x50] sm:$0xff]  ;;  %v2174_v34 = vld [vmem:[%s3563_s2 + $0x78] sm:$0xff] }
   0xa   :  { %814 = vrot.lane.b32.xlu1 %v2985_v0, %s2934_s12  ;;  %44 = vrot.lane.b32.xlu0 %v2985_v0, %s2935_s13  ;;  %v3075_v27 = vld [vmem:[%s3565_s1 + $0x4] ss:$0 sm:$0xff]  ;;  %v2157_v35 = vld [vmem:[%s3563_s2 + $0x58] sm:$0xff] }
   0xb   :  { %v2175_v36 = vld [vmem:[%s3563_s2 + $0x80] sm:$0xff]  ;;  %v2176_v37 = vld [vmem:[%s3563_s2 + $0x88] sm:$0xff]  ;;  %v2183_v38 = vld [vmem:[%s3563_s2 + $0x90] sm:$0xff] }
   0xc   :  { %v3120_v39 = vld [vmem:[%s3565_s1 + $0x5] ss:$0 sm:$0xff]  ;;  %v2184_v41 = vld [vmem:[%s3563_s2 + $0x98] sm:$0xff]  ;;  %v2186_v44 = vld [vmem:[%s3563_s2 + $0xa8] sm:$0xff] }
   0xd   :  { %v2185_v42 = vld [vmem:[%s3563_s2 + $0xa0] sm:$0xff]  ;;  %v2187_v45 = vld [vmem:[%s3563_s2 + $0xb0] sm:$0xff]  ;;  %v2188_v46 = vld [vmem:[%s3563_s2 + $0xb8] sm:$0xff] }
   0xe   :  { %961 = vperm.xlu1 %2929, %v949_v4   ;;  %956 = vperm.xlu0 %2928, %v948_v5   ;;  %v2196_v47 = vld [vmem:[%s3563_s2 + $0xc0] sm:$0xff]  ;;  %v2197_v50 = vld [vmem:[%s3563_s2 + $0xc8] sm:$0xff]  ;;  %v2198_v51 = vld [vmem:[%s3563_s2 + $0xd0] sm:$0xff] }
   0xf   :  { %v3150_v48 = vld [vmem:[%s3565_s1 + $0x6] ss:$0 sm:$0xff]  ;;  %v2199_v53 = vld [vmem:[%s3563_s2 + $0xd8] sm:$0xff]  ;;  %v2201_v55 = vld [vmem:[%s3563_s2 + $0xe8] sm:$0xff] }
  0x10   :  { %v2200_v54 = vld [vmem:[%s3563_s2 + $0xe0] sm:$0xff]  ;;  %v2209_v56 = vld [vmem:[%s3563_s2 + $0xf0] sm:$0xff]  ;;  %v2210_v57 = vld [vmem:[%s3563_s2 + $0xf8] sm:$0xff] }
  0x11   :  { %v2211_v58 = vld [vmem:[%s3563_s2 + $0x100] sm:$0xff]  ;;  %v2212_v59 = vld [vmem:[%s3563_s2 + $0x108] sm:$0xff]  ;;  %v2213_v60 = vld [vmem:[%s3563_s2 + $0x110] sm:$0xff] }
  0x12   :  { %966 = vperm.xlu1 %2929, %v950_v6   ;;  %971 = vperm.xlu0 %2928, %v951_v7   ;;  %v2214_v61 = vld [vmem:[%s3563_s2 + $0x118] sm:$0xff]  ;;  %v2222_v62 = vld [vmem:[%s3563_s2 + $0x120] sm:$0xff]  ;;  %v2223_v63 = vld [vmem:[%s3563_s2 + $0x128] sm:$0xff] }
  0x13   :  { %v2225_v1 = vld [vmem:[%s3563_s2 + $0x138] sm:$0xff]  ;;  %v2226_v2 = vld [vmem:[%s3563_s2 + $0x140] sm:$0xff]  ;;  %v2227_v3 = vld [vmem:[%s3563_s2 + $0x148] sm:$0xff] }
  0x16   :  { %976 = vperm.xlu1 %2929, %v952_v8   ;;  %981 = vperm.xlu0 %2928, %v953_v9  }
  0x74   :  { %v31_v11 = vpop.permute.xlu0 %30  ;;  %v547_v28 = vpop.permute.xlu1 %546 }
  0x75   :  { %v37_v12 = vmul.f32 %v3028_v10, %v31_v11  ;;  %v553_v32 = vmul.f32 %v3075_v27, %v547_v28 }
  0x77   :  { %2479 = vmatprep.subr.mxu0 %v37_v12 }
  0x78   :  { %2480 = vmatpush3.msra.mxu0 %v37_v12  ;;  %v287_v16 = vpop.permute.xlu0 %286  ;;  %v681_v40 = vpop.permute.xlu1 %680 }
  0x79   :  { %v293_v17 = vmul.f32 %v3034_v13, %v287_v16  ;;  %2482 = vmatmul.mubr.msk.f32.vlgmr.msra.gmra.mrb[0].mxu0 %vm59_vm0, %v39_v14  ;;  %v687_v43 = vmul.f32 %v3120_v39, %v681_v40 }
  0x7a   :  { %2484 = vmatprep.mubr.msk.f32.mxu0 %vm59_vm0, %v40_v15 }
  0x7b   :  { %2490 = vmatprep.subr.mxu0 %v293_v17 }
  0x7c   :  { %2491 = vmatpush3.msra.mxu0 %v293_v17  ;;  %v45_v21 = vpop.permute.xlu0 %44  ;;  %v815_v49 = vpop.permute.xlu1 %814 }
  0x7d   :  { %2485 = vmatmul.mubr.msk.f32.gmra.mrb[2].mxu0 %vm59_vm0, %v41_v18  ;;  %2501 = vmatprep.subr.mxu0 %v2985_v0  ;;  %v51_v22 = vmul.f32 %v3051_v19, %v45_v21  ;;  %v821_v52 = vmul.f32 %v3150_v48, %v815_v49 }
  0x7e   :  { %2487 = vmatprep.mubr.msk.f32.mxu0 %vm59_vm0, %v42_v20 }
  0x7f   :  { %2468 = vmatprep.subr.mxu1 %v51_v22 }
  0x80   :  { %2469 = vmatpush3.msra.mxu1 %v51_v22 }
  0x81   :  { %2488 = vmatmul.mubr.msk.f32.gmra.mrb[4].mxu0 %vm59_vm0, %v43_v23  ;;  %2471 = vmatmul.mubr.msk.f32.vlgmr.msra.gmra.mrb[0].mxu1 %vm59_vm0, %v2153_v24 }
  0x82   :  { %2492 = vmatprep.mubr.msk.f32.mxu0 %vm59_vm0, %v2171_v25  ;;  %2473 = vmatprep.mubr.msk.f32.mxu1 %vm59_vm0, %v2154_v26 }
  0x85   :  { %2493 = vmatmul.mubr.msk.f32.vlgmr.msra.gmra.mrb[0].mxu0 %vm59_vm0, %v2172_v29  ;;  %2474 = vmatmul.mubr.msk.f32.gmra.mrb[2].mxu1 %vm59_vm0, %v2155_v30 }
  0x86   :  { %2495 = vmatprep.mubr.msk.f32.mxu0 %vm59_vm0, %v2173_v31  ;;  %2502 = vmatpush3.msra.mxu0 %v2985_v0  ;;  %v2224_v0 = vld [vmem:[%s3563_s2 + $0x130] sm:$0xff] }
  0x87   :  { %2512 = vmatprep.subr.mxu0 %v553_v32  ;;  %2476 = vmatprep.mubr.msk.f32.mxu1 %vm59_vm0, %v2156_v33 }
  0x89   :  { %2496 = vmatmul.mubr.msk.f32.gmra.mrb[2].mxu0 %vm59_vm0, %v2174_v34  ;;  %2477 = vmatmul.mubr.msk.f32.gmra.mrb[4].mxu1 %vm59_vm0, %v2157_v35 }
  0x8a   :  { %2498 = vmatprep.mubr.msk.f32.mxu0 %vm59_vm0, %v2175_v36 }
  0x8d   :  { %2499 = vmatmul.mubr.msk.f32.gmra.mrb[4].mxu0 %vm59_vm0, %v2176_v37  ;;  %v957_v11 = vpop.permute.xlu0 %956  ;;  %v962_v12 = vpop.permute.xlu1 %961  ;;  %v2234_v37 = vld [vmem:[%s3566_s4 + $0x30] sm:$0xff] }
  0x8e   :  { %2503 = vmatprep.mubr.msk.f32.mxu0 %vm59_vm0, %v2183_v38  ;;  %2557 = vmatprep.mubr.msk.f32.mxu1 %vm1045_vm1, %v2234_v37  ;;  %v2235_v37 = vld [vmem:[%s3566_s4 + $0x38] sm:$0xff] }
  0x91   :  { %2504 = vmatmul.mubr.msk.f32.vlgmr.msra.gmra.mrb[0].mxu0 %vm59_vm0, %v2184_v41  ;;  %v972_v21 = vpop.permute.xlu0 %971  ;;  %v967_v24 = vpop.permute.xlu1 %966 }
  0x92   :  { %2513 = vmatpush3.msra.mxu0 %v553_v32  ;;  %2506 = vmatprep.mubr.msk.f32.mxu0 %vm59_vm0, %v2185_v42 }
  0x93   :  { %2523 = vmatprep.subr.mxu0 %v687_v43 }
  0x95   :  { %2507 = vmatmul.mubr.msk.f32.gmra.mrb[2].mxu0 %vm59_vm0, %v2186_v44  ;;  %v982_v40 = vpop.permute.xlu0 %981  ;;  %v977_v42 = vpop.permute.xlu1 %976 }
  0x96   :  { %2509 = vmatprep.mubr.msk.f32.mxu0 %vm59_vm0, %v2187_v45 }
  0x99   :  { %2510 = vmatmul.mubr.msk.f32.gmra.mrb[4].mxu0 %vm59_vm0, %v2188_v46 }
  0x9a   :  { %2514 = vmatprep.mubr.msk.f32.mxu0 %vm59_vm0, %v2196_v47 }
  0x9d   :  { %2515 = vmatmul.mubr.msk.f32.vlgmr.msra.gmra.mrb[0].mxu0 %vm59_vm0, %v2197_v50  ;;  %v1975_v50 = vld [vmem:[%s3567_s5 + $0x8] sm:$0xff] }
  0x9e   :  { %2524 = vmatpush3.msra.mxu0 %v687_v43  ;;  %2517 = vmatprep.mubr.msk.f32.mxu0 %vm59_vm0, %v2198_v51  ;;  %v1974_v51 = vld [vmem:[%s3567_s5] sm:$0xff] }
  0x9f   :  { %2534 = vmatprep.subr.mxu0 %v821_v52 }
  0xa1   :  { %2518 = vmatmul.mubr.msk.f32.gmra.mrb[2].mxu0 %vm59_vm0, %v2199_v53  ;;  %v1976_v53 = vld [vmem:[%s3567_s5 + $0x10] sm:$0xff] }
  0xa2   :  { %2520 = vmatprep.mubr.msk.f32.mxu0 %vm59_vm0, %v2200_v54  ;;  %v1979_v54 = vld [vmem:[%s3567_s5 + $0x28] sm:$0xff] }
  0xa5   :  { %2521 = vmatmul.mubr.msk.f32.gmra.mrb[4].mxu0 %vm59_vm0, %v2201_v55  ;;  %v1978_v55 = vld [vmem:[%s3567_s5 + $0x20] sm:$0xff] }
  0xa6   :  { %2525 = vmatprep.mubr.msk.f32.mxu0 %vm59_vm0, %v2209_v56  ;;  %v2022_v56 = vld [vmem:[%s3568_s6] sm:$0xff] }
  0xa9   :  { %2526 = vmatmul.mubr.msk.f32.vlgmr.msra.gmra.mrb[0].mxu0 %vm59_vm0, %v2210_v57  ;;  %v2023_v57 = vld [vmem:[%s3568_s6 + $0x8] sm:$0xff] }
  0xaa   :  { %2535 = vmatpush3.msra.mxu0 %v821_v52  ;;  %2528 = vmatprep.mubr.msk.f32.mxu0 %vm59_vm0, %v2211_v58  ;;  %v1977_v52 = vld [vmem:[%s3567_s5 + $0x18] sm:$0xff]  ;;  %v2024_v58 = vld [vmem:[%s3568_s6 + $0x10] sm:$0xff] }
  0xad   :  { %2529 = vmatmul.mubr.msk.f32.gmra.mrb[2].mxu0 %vm59_vm0, %v2212_v59  ;;  %v2817_v59 = vpack.c.bf16 %v2023_v57, %v2022_v56  ;;  %v1014_v57 = vld [vmem:[%s3566_s4] sm:$0xff] }
  0xae   :  { %2531 = vmatprep.mubr.msk.f32.mxu0 %vm59_vm0, %v2213_v60  ;;  %v2025_v60 = vld [vmem:[%s3568_s6 + $0x18] sm:$0xff] }
  0xaf   :  { %2818 = vmatprep.subr.bf16.mxu0 %v2817_v59 }
  0xb1   :  { %2532 = vmatmul.mubr.msk.f32.gmra.mrb[4].mxu0 %vm59_vm0, %v2214_v61  ;;  %v2821_v61 = vpack.c.bf16 %v2025_v60, %v2024_v58  ;;  %v1015_v60 = vld [vmem:[%s3566_s4 + $0x8] sm:$0xff] }
  0xb2   :  { %2536 = vmatprep.mubr.msk.f32.mxu0 %vm59_vm0, %v2222_v62  ;;  %v2026_v62 = vld [vmem:[%s3568_s6 + $0x20] sm:$0xff] }
  0xb5   :  { %2537 = vmatmul.mubr.msk.f32.vlgmr.msra.gmra.mrb[0].mxu0 %vm59_vm0, %v2223_v63  ;;  %v2027_v63 = vld [vmem:[%s3568_s6 + $0x28] sm:$0xff] }
  0xb6   :  { %2539 = vmatprep.mubr.msk.f32.mxu0 %vm59_vm0, %v2224_v0  ;;  %2820 = vmatpush3.bf16.msra.mxu0 %v2817_v59  ;;  %v2825_v0 = vpack.c.bf16 %v2027_v63, %v2026_v62  ;;  %v1016_v63 = vld [vmem:[%s3566_s4 + $0x10] sm:$0xff] }
  0xb7   :  { %2822 = vmatprep.subr.bf16.mxu0 %v2821_v61 }
  0xb9   :  { %2540 = vmatmul.mubr.msk.f32.gmra.mrb[2].mxu0 %vm59_vm0, %v2225_v1  ;;  %v2028_v1 = vld [vmem:[%s3568_s6 + $0x30] sm:$0xff] }
  0xba   :  { %2542 = vmatprep.mubr.msk.f32.mxu0 %vm59_vm0, %v2226_v2  ;;  %v2029_v2 = vld [vmem:[%s3568_s6 + $0x38] sm:$0xff]  ;;  %2824 = vmatpush3.bf16.msra.mxu0 %v2821_v61 }
  0xbb   :  { %2826 = vmatprep.subr.bf16.mxu0 %v2825_v0 }
  0xbd   :  { %2543 = vmatmul.mubr.msk.f32.gmra.mrb[4].mxu0 %vm59_vm0, %v2227_v3  ;;  %v2829_v3 = vpack.c.bf16 %v2029_v2, %v2028_v1 }
  0xbe   :  { %2828 = vmatpush3.bf16.msra.mxu0 %v2825_v0 }
  0xbf   :  { %2830 = vmatprep.subr.bf16.mxu0 %v2829_v3 }
  0xc2   :  { %2832 = vmatpush3.bf16.msra.mxu0 %v2829_v3  ;;  %v1017_v3 = vld [vmem:[%s3566_s4 + $0x18] sm:$0xff] }
 0x154   :  { %v2472_v4 = vpop.f32.mrb[0].mxu1 }
 0x155   :  { %v144_v5 = vpop.f32.mrb[1].mxu1 }
 0x158   :  { %v2475_v6 = vpop.f32.mrb[2].mxu1 }
 0x159   :  { %v154_v7 = vpop.f32.mrb[3].mxu1 }
 0x15c   :  { %v2478_v8 = vpop.f32.mrb[4].mxu1 }
 0x15d   :  { %v164_v9 = vpop.f32.mrb[5].mxu1 }
 0x188   :  { %v2538_v14 = vpop.f32.mrb[0].mxu0 }
 0x189   :  { %v2849_v15 = vadd.f32 %v2538_v14, %v2472_v4  ;;  %v913_v16 = vpop.f32.mrb[1].mxu0  ;;  %v2030_v4 = vld [vmem:[%s3568_s6 + $0x40] sm:$0xff] }
 0x18a   :  { %v2850_v17 = vadd.f32 %v913_v16, %v144_v5  ;;  %v2031_v5 = vld [vmem:[%s3568_s6 + $0x48] sm:$0xff] }
 0x18b   :  { %v985_v18 = vadd.f32 %v2849_v15, %v962_v12  ;;  %v2035_v12 = vld [vmem:[%s3568_s6 + $0x68] sm:$0xff] }
 0x18c   :  { %v984_v20 = vadd.f32 %v2850_v17, %v957_v11  ;;  %v2541_v22 = vpop.f32.mrb[2].mxu0  ;;  %v2034_v11 = vld [vmem:[%s3568_s6 + $0x60] sm:$0xff] }
 0x18d   :  { %v991_v23 = vmax.f32 %v985_v18, 0.0  ;;  %v2851_v25 = vadd.f32 %v2541_v22, %v2475_v6  ;;  %v923_v26 = vpop.f32.mrb[3].mxu0  ;;  %v2833_v6 = vpack.c.bf16 %v2031_v5, %v2030_v4  ;;  %v2841_v14 = vpack.c.bf16 %v2035_v12, %v2034_v11  ;;  %v1019_v11 = vld [vmem:[%s3566_s4 + $0x28] sm:$0xff] }
 0x18e   :  { %v990_v28 = vmax.f32 %v984_v20, 0.0  ;;  %v2852_v29 = vadd.f32 %v923_v26, %v154_v7  ;;  %v2032_v7 = vld [vmem:[%s3568_s6 + $0x50] sm:$0xff] }
 0x18f   :  { %v987_v30 = vadd.f32 %v2851_v25, %v972_v21  ;;  %1022 = vrot.lane.b32.xlu0 %v991_v23, %s2935_s13  ;;  %2834 = vmatprep.subr.bf16.mxu0 %v2833_v6 }
 0x190   :  { %v986_v31 = vadd.f32 %v2852_v29, %v967_v24  ;;  %v2544_v32 = vpop.f32.mrb[4].mxu0  ;;  %1020 = vrot.lane.b32.xlu1 %v990_v28, %s2935_s13  ;;  %v3225_v33 = vpack.c.bf16 %v991_v23, %v990_v28  ;;  %2836 = vmatpush3.bf16.msra.mxu0 %v2833_v6  ;;  %v1018_v6 = vld [vmem:[%s3566_s4 + $0x20] sm:$0xff] }
 0x191   :  { %v993_v34 = vmax.f32 %v987_v30, 0.0  ;;  %v2853_v35 = vadd.f32 %v2544_v32, %v2478_v8  ;;  %v933_v36 = vpop.f32.mrb[5].mxu0  ;;  %v2033_v8 = vld [vmem:[%s3568_s6 + $0x58] sm:$0xff] }
 0x192   :  { %v992_v38 = vmax.f32 %v986_v31, 0.0  ;;  %v2854_v41 = vadd.f32 %v933_v36, %v164_v9  ;;  %v2837_v9 = vpack.c.bf16 %v2033_v8, %v2032_v7 }
 0x193   :  { %v989_v43 = vadd.f32 %v2853_v35, %v982_v40  ;;  %1026 = vrot.lane.b32.xlu0 %v993_v34, %s2935_s13 }
 0x194   :  { %v988_v44 = vadd.f32 %v2854_v41, %v977_v42  ;;  %1024 = vrot.lane.b32.xlu1 %v992_v38, %s2935_s13  ;;  %v3233_v45 = vpack.c.bf16 %v993_v34, %v992_v38  ;;  %2838 = vmatprep.subr.bf16.mxu0 %v2837_v9 }
 0x195   :  { %v995_v46 = vmax.f32 %v989_v43, 0.0  ;;  %2840 = vmatpush3.bf16.msra.mxu0 %v2837_v9 }
 0x196   :  { %v994_v47 = vmax.f32 %v988_v44, 0.0  ;;  %2842 = vmatprep.subr.bf16.mxu0 %v2841_v14  ;;  %v2237_v44 = vld [vmem:[%s3566_s4 + $0x48] sm:$0xff] }
 0x197   :  { %1030 = vrot.lane.b32.xlu0 %v995_v46, %s2935_s13 }
 0x198   :  { %1028 = vrot.lane.b32.xlu1 %v994_v47, %s2935_s13  ;;  %v3237_v49 = vpack.c.bf16 %v995_v46, %v994_v47 }
 0x199   :  { %2844 = vmatpush3.bf16.msra.mxu0 %v2841_v14 }
 0x19b   :  { %998 = vrot.lane.b32.xlu0 %v991_v23, %s2930_s9 }
 0x19c   :  { %996 = vrot.lane.b32.xlu1 %v990_v28, %s2930_s9 }
 0x19f   :  { %1002 = vrot.lane.b32.xlu0 %v993_v34, %s2930_s9 }
 0x1a0   :  { %1000 = vrot.lane.b32.xlu1 %v992_v38, %s2930_s9 }
 0x1a3   :  { %1006 = vrot.lane.b32.xlu0 %v995_v46, %s2930_s9 }
 0x1a4   :  { %1004 = vrot.lane.b32.xlu1 %v994_v47, %s2930_s9 }
 0x1a7   :  { %1274 = vrot.lane.b32.xlu0 %v991_v23, %s2932_s11 }
 0x1a8   :  { %1272 = vrot.lane.b32.xlu1 %v990_v28, %s2932_s11 }
 0x1ab   :  { %1278 = vrot.lane.b32.xlu0 %v993_v34, %s2932_s11 }
 0x1ac   :  { %1276 = vrot.lane.b32.xlu1 %v992_v38, %s2932_s11 }
 0x1af   :  { %1282 = vrot.lane.b32.xlu0 %v995_v46, %s2932_s11 }
 0x1b0   :  { %1280 = vrot.lane.b32.xlu1 %v994_v47, %s2932_s11 }
 0x1b3   :  { %1544 = vrot.lane.b32.xlu0 %v991_v23, %s2931_s10 }
 0x1b4   :  { %1542 = vrot.lane.b32.xlu1 %v990_v28, %s2931_s10 }
 0x1b7   :  { %1548 = vrot.lane.b32.xlu0 %v993_v34, %s2931_s10 }
 0x1b8   :  { %1546 = vrot.lane.b32.xlu1 %v992_v38, %s2931_s10 }
 0x1bb   :  { %1552 = vrot.lane.b32.xlu0 %v995_v46, %s2931_s10 }
 0x1bc   :  { %1550 = vrot.lane.b32.xlu1 %v994_v47, %s2931_s10 }
 0x1bf   :  { %1688 = vrot.lane.b32.xlu0 %v991_v23, %s2933_s0 }
 0x1c0   :  { %1686 = vrot.lane.b32.xlu1 %v990_v28, %s2933_s0 }
 0x1c3   :  { %1692 = vrot.lane.b32.xlu0 %v993_v34, %s2933_s0 }
 0x1c4   :  { %1690 = vrot.lane.b32.xlu1 %v992_v38, %s2933_s0 }
 0x1c7   :  { %1696 = vrot.lane.b32.xlu0 %v995_v46, %s2933_s0 }
 0x1c8   :  { %1694 = vrot.lane.b32.xlu1 %v994_v47, %s2933_s0 }
 0x1cb   :  { %1832 = vrot.lane.b32.xlu0 %v991_v23, %s2934_s12 }
 0x1cc   :  { %1830 = vrot.lane.b32.xlu1 %v990_v28, %s2934_s12 }
 0x1cf   :  { %1836 = vrot.lane.b32.xlu0 %v993_v34, %s2934_s12 }
 0x1d0   :  { %1834 = vrot.lane.b32.xlu1 %v992_v38, %s2934_s12 }
 0x1d3   :  { %1840 = vrot.lane.b32.xlu0 %v995_v46, %s2934_s12 }
 0x1d4   :  { %1838 = vrot.lane.b32.xlu1 %v994_v47, %s2934_s12 }
 0x1d7   :  { %1987 = vperm.xlu0 %2928, %v1975_v50   ;;  %v2238_v50 = vld [vmem:[%s3566_s4 + $0x50] sm:$0xff] }
 0x1d8   :  { %1982 = vperm.xlu1 %2929, %v1974_v51  }
 0x1db   :  { %1997 = vperm.xlu0 %2928, %v1977_v52  }
 0x1dc   :  { %1992 = vperm.xlu1 %2929, %v1976_v53  }
 0x1df   :  { %2007 = vperm.xlu0 %2928, %v1979_v54   ;;  %v2239_v54 = vld [vmem:[%s3566_s4 + $0x58] sm:$0xff] }
 0x1e0   :  { %2002 = vperm.xlu1 %2929, %v1978_v55  }
 0x201   :  { %v1023_v15 = vpop.permute.xlu0 %1022 }
 0x202   :  { %v1033_v16 = vmul.f32 %v3051_v19, %v1023_v15  ;;  %v1021_v17 = vpop.permute.xlu1 %1020  ;;  %v2252_v15 = vld [vmem:[%s3566_s4 + $0x60] sm:$0xff] }
 0x203   :  { %v1032_v18 = vmul.f32 %v3051_v19, %v1021_v17 }
 0x205   :  { %v2733_v20 = vpack.c.bf16 %v1033_v16, %v1032_v18  ;;  %v1027_v21 = vpop.permute.xlu0 %1026  ;;  %v2254_v18 = vld [vmem:[%s3566_s4 + $0x70] sm:$0xff] }
 0x206   :  { %v1035_v22 = vmul.f32 %v3051_v19, %v1027_v21  ;;  %v1025_v23 = vpop.permute.xlu1 %1024  ;;  %v2255_v21 = vld [vmem:[%s3566_s4 + $0x78] sm:$0xff] }
 0x207   :  { %v1034_v24 = vmul.f32 %v3051_v19, %v1025_v23  ;;  %2734 = vmatprep.subr.bf16.mxu1 %v2733_v20  ;;  %v2256_v23 = vld [vmem:[%s3566_s4 + $0x80] sm:$0xff] }
 0x208   :  { %2736 = vmatpush3.bf16.msra.mxu1 %v2733_v20 }
 0x209   :  { %v2737_v25 = vpack.c.bf16 %v1035_v22, %v1034_v24  ;;  %v1031_v26 = vpop.permute.xlu0 %1030 }
 0x20a   :  { %v1037_v28 = vmul.f32 %v3051_v19, %v1031_v26  ;;  %v1029_v29 = vpop.permute.xlu1 %1028 }
 0x20b   :  { %v1036_v30 = vmul.f32 %v3051_v19, %v1029_v29  ;;  %2738 = vmatprep.subr.bf16.mxu1 %v2737_v25  ;;  %v2236_v19 = vld [vmem:[%s3566_s4 + $0x40] sm:$0xff]  ;;  %v2264_v29 = vld [vmem:[%s3566_s4 + $0x90] sm:$0xff] }
 0x20c   :  { %2740 = vmatpush3.bf16.msra.mxu1 %v2737_v25 }
 0x20d   :  { %v2741_v31 = vpack.c.bf16 %v1037_v28, %v1036_v30  ;;  %v999_v32 = vpop.permute.xlu0 %998 }
 0x20e   :  { %v1009_v34 = vmul.f32 %v3028_v10, %v999_v32  ;;  %v997_v35 = vpop.permute.xlu1 %996 }
 0x20f   :  { %v1008_v36 = vmul.f32 %v3028_v10, %v997_v35  ;;  %2742 = vmatprep.subr.bf16.mxu1 %v2741_v31 }
 0x210   :  { %2744 = vmatpush3.bf16.msra.mxu1 %v2741_v31 }
 0x211   :  { %v2745_v38 = vpack.c.bf16 %v1009_v34, %v1008_v36  ;;  %v1003_v40 = vpop.permute.xlu0 %1002  ;;  %v2266_v36 = vld [vmem:[%s3566_s4 + $0xa0] sm:$0xff] }
 0x212   :  { %v1011_v41 = vmul.f32 %v3028_v10, %v1003_v40  ;;  %v1001_v42 = vpop.permute.xlu1 %1000 }
 0x213   :  { %v1010_v43 = vmul.f32 %v3028_v10, %v1001_v42  ;;  %2558 = vmatmul.mubr.msk.f32.vlgmr.msra.gmra.mrb[6].mxu1 %vm1045_vm1, %v2235_v37  ;;  %2746 = vmatprep.subr.bf16.mxu1 %v2745_v38 }
 0x214   :  { %2748 = vmatpush3.bf16.msra.mxu1 %v2745_v38  ;;  %2560 = vmatprep.mubr.msk.f32.mxu1 %vm1045_vm1, %v2236_v19 }
 0x215   :  { %v2749_v46 = vpack.c.bf16 %v1011_v41, %v1010_v43  ;;  %v1007_v47 = vpop.permute.xlu0 %1006  ;;  %v2268_v41 = vld [vmem:[%s3566_s4 + $0xb0] sm:$0xff] }
 0x216   :  { %v1013_v51 = vmul.f32 %v3028_v10, %v1007_v47  ;;  %v1005_v52 = vpop.permute.xlu1 %1004  ;;  %v2269_v47 = vld [vmem:[%s3566_s4 + $0xb8] sm:$0xff] }
 0x217   :  { %v1012_v53 = vmul.f32 %v3028_v10, %v1005_v52  ;;  %2561 = vmatmul.mubr.msk.f32.gmra.mrb[8].mxu1 %vm1045_vm1, %v2237_v44  ;;  %2750 = vmatprep.subr.bf16.mxu1 %v2749_v46 }
 0x218   :  { %2752 = vmatpush3.bf16.msra.mxu1 %v2749_v46  ;;  %2563 = vmatprep.mubr.msk.f32.mxu1 %vm1045_vm1, %v2238_v50  ;;  %v2276_v50 = vld [vmem:[%s3566_s4 + $0xc0] sm:$0xff] }
 0x219   :  { %v2753_v55 = vpack.c.bf16 %v1013_v51, %v1012_v53  ;;  %v1275_v56 = vpop.permute.xlu0 %1274 }
 0x21a   :  { %v1285_v58 = vmul.f32 %v3034_v13, %v1275_v56  ;;  %v1273_v59 = vpop.permute.xlu1 %1272  ;;  %v2277_v56 = vld [vmem:[%s3566_s4 + $0xc8] sm:$0xff] }
 0x21b   :  { %v1284_v10 = vmul.f32 %v3034_v13, %v1273_v59  ;;  %2564 = vmatmul.mubr.msk.f32.gmra.mrb[10].mxu1 %vm1045_vm1, %v2239_v54  ;;  %2754 = vmatprep.subr.bf16.mxu1 %v2753_v55 }
 0x21c   :  { %2756 = vmatpush3.bf16.msra.mxu1 %v2753_v55  ;;  %2578 = vmatprep.mubr.msk.f32.mxu1 %vm1045_vm1, %v1014_v57  ;;  %v2278_v57 = vld [vmem:[%s3566_s4 + $0xd0] sm:$0xff] }
 0x21d   :  { %v2757_v61 = vpack.c.bf16 %v1285_v58, %v1284_v10  ;;  %v1279_v62 = vpop.permute.xlu0 %1278 }
 0x21e   :  { %v1287_v0 = vmul.f32 %v3034_v13, %v1279_v62  ;;  %v1277_v1 = vpop.permute.xlu1 %1276 }
 0x21f   :  { %v1286_v2 = vmul.f32 %v3034_v13, %v1277_v1  ;;  %2579 = vmatmul.mubr.msk.f32.vlgmr.msra.gmra.mrb[6].mxu1 %vm1045_vm1, %v1015_v60  ;;  %2758 = vmatprep.subr.bf16.mxu1 %v2757_v61  ;;  %v2279_v60 = vld [vmem:[%s3566_s4 + $0xd8] sm:$0xff] }
 0x220   :  { %2760 = vmatpush3.bf16.msra.mxu1 %v2757_v61  ;;  %2581 = vmatprep.mubr.msk.f32.mxu1 %vm1045_vm1, %v1016_v63  ;;  %v2280_v61 = vld [vmem:[%s3566_s4 + $0xe0] sm:$0xff] }
 0x221   :  { %v2761_v4 = vpack.c.bf16 %v1287_v0, %v1286_v2  ;;  %v1283_v5 = vpop.permute.xlu0 %1282  ;;  %v2281_v2 = vld [vmem:[%s3566_s4 + $0xe8] sm:$0xff] }
 0x222   :  { %v1289_v7 = vmul.f32 %v3034_v13, %v1283_v5  ;;  %v1281_v8 = vpop.permute.xlu1 %1280 }
 0x223   :  { %v1288_v9 = vmul.f32 %v3034_v13, %v1281_v8  ;;  %2582 = vmatmul.mubr.msk.f32.gmra.mrb[8].mxu1 %vm1045_vm1, %v1017_v3  ;;  %2762 = vmatprep.subr.bf16.mxu1 %v2761_v4  ;;  %v2253_v13 = vld [vmem:[%s3566_s4 + $0x68] sm:$0xff]  ;;  %v2288_v3 = vld [vmem:[%s3566_s4 + $0xf0] sm:$0xff] }
 0x224   :  { %2764 = vmatpush3.bf16.msra.mxu1 %v2761_v4  ;;  %2584 = vmatprep.mubr.msk.f32.mxu1 %vm1045_vm1, %v1018_v6 }
 0x225   :  { %v2765_v12 = vpack.c.bf16 %v1289_v7, %v1288_v9  ;;  %v1545_v14 = vpop.permute.xlu0 %1544  ;;  %v2289_v9 = vld [vmem:[%s3566_s4 + $0xf8] sm:$0xff] }
 0x226   :  { %v1543_v16 = vpop.permute.xlu1 %1542  ;;  %v1555_v25 = vmul.f32 %v3075_v27, %v1545_v14 }
 0x227   :  { %2585 = vmatmul.mubr.msk.f32.gmra.mrb[10].mxu1 %vm1045_vm1, %v1019_v11  ;;  %2766 = vmatprep.subr.bf16.mxu1 %v2765_v12  ;;  %v1554_v26 = vmul.f32 %v3075_v27, %v1543_v16  ;;  %v2290_v11 = vld [vmem:[%s3566_s4 + $0x100] sm:$0xff]  ;;  %v2291_v16 = vld [vmem:[%s3566_s4 + $0x108] sm:$0xff] }
 0x228   :  { %2768 = vmatpush3.bf16.msra.mxu1 %v2765_v12  ;;  %2599 = vmatprep.mubr.msk.f32.mxu1 %vm1045_vm1, %v2252_v15 }
 0x229   :  { %2770 = vmatprep.subr.bf16.mxu1 %v3225_v33  ;;  %v1549_v17 = vpop.permute.xlu0 %1548  ;;  %v2781_v31 = vpack.c.bf16 %v1555_v25, %v1554_v26  ;;  %v2036_v25 = vld [vmem:[%s3568_s6 + $0x70] sm:$0xff]  ;;  %v2037_v26 = vld [vmem:[%s3568_s6 + $0x78] sm:$0xff] }
 0x22a   :  { %v1547_v20 = vpop.permute.xlu1 %1546  ;;  %v1557_v32 = vmul.f32 %v3075_v27, %v1549_v17 }
 0x22b   :  { %2600 = vmatmul.mubr.msk.f32.vlgmr.msra.gmra.mrb[6].mxu1 %vm1045_vm1, %v2253_v13  ;;  %v1556_v34 = vmul.f32 %v3075_v27, %v1547_v20  ;;  %v2292_v13 = vld [vmem:[%s3566_s4 + $0x110] sm:$0xff]  ;;  %v2301_v20 = vld [vmem:[%s3566_s4 + $0x128] sm:$0xff] }
 0x22c   :  { %2772 = vmatpush3.bf16.msra.mxu1 %v3225_v33  ;;  %2602 = vmatprep.mubr.msk.f32.mxu1 %vm1045_vm1, %v2254_v18  ;;  %v2257_v33 = vld [vmem:[%s3566_s4 + $0x88] sm:$0xff]  ;;  %v2300_v18 = vld [vmem:[%s3566_s4 + $0x120] sm:$0xff] }
 0x22d   :  { %2774 = vmatprep.subr.bf16.mxu1 %v3233_v45  ;;  %v1553_v22 = vpop.permute.xlu0 %1552  ;;  %v2785_v38 = vpack.c.bf16 %v1557_v32, %v1556_v34 }
 0x22e   :  { %v1551_v24 = vpop.permute.xlu1 %1550  ;;  %v1559_v40 = vmul.f32 %v3075_v27, %v1553_v22  ;;  %v2303_v22 = vld [vmem:[%s3566_s4 + $0x138] sm:$0xff] }
 0x22f   :  { %2603 = vmatmul.mubr.msk.f32.gmra.mrb[8].mxu1 %vm1045_vm1, %v2255_v21  ;;  %v1558_v19 = vmul.f32 %v3075_v27, %v1551_v24  ;;  %v2302_v21 = vld [vmem:[%s3566_s4 + $0x130] sm:$0xff]  ;;  %v2305_v24 = vld [vmem:[%s3566_s4 + $0x148] sm:$0xff] }
 0x230   :  { %2776 = vmatpush3.bf16.msra.mxu1 %v3233_v45  ;;  %2605 = vmatprep.mubr.msk.f32.mxu1 %vm1045_vm1, %v2256_v23  ;;  %v2265_v45 = vld [vmem:[%s3566_s4 + $0x98] sm:$0xff]  ;;  %v2304_v23 = vld [vmem:[%s3566_s4 + $0x140] sm:$0xff] }
 0x231   :  { %2778 = vmatprep.subr.bf16.mxu1 %v3237_v49  ;;  %v1689_v28 = vpop.permute.xlu0 %1688  ;;  %v2789_v44 = vpack.c.bf16 %v1559_v40, %v1558_v19 }
 0x232   :  { %v1687_v30 = vpop.permute.xlu1 %1686  ;;  %v1699_v46 = vmul.f32 %v3120_v39, %v1689_v28 }
 0x233   :  { %2606 = vmatmul.mubr.msk.f32.gmra.mrb[10].mxu1 %vm1045_vm1, %v2257_v33  ;;  %v1698_v27 = vmul.f32 %v3120_v39, %v1687_v30  ;;  %v2845_v33 = vpack.c.bf16 %v2037_v26, %v2036_v25 }
 0x234   :  { %2780 = vmatpush3.bf16.msra.mxu1 %v3237_v49  ;;  %2620 = vmatprep.mubr.msk.f32.mxu1 %vm1045_vm1, %v2264_v29  ;;  %v2267_v49 = vld [vmem:[%s3566_s4 + $0xa8] sm:$0xff] }
 0x235   :  { %2782 = vmatprep.subr.bf16.mxu1 %v2781_v31  ;;  %v1693_v35 = vpop.permute.xlu0 %1692  ;;  %v2793_v51 = vpack.c.bf16 %v1699_v46, %v1698_v27  ;;  %2846 = vmatprep.subr.bf16.mxu0 %v2845_v33 }
 0x236   :  { %v1691_v37 = vpop.permute.xlu1 %1690  ;;  %v1701_v52 = vmul.f32 %v3120_v39, %v1693_v35  ;;  %2848 = vmatpush3.bf16.msra.mxu0 %v2845_v33 }
 0x237   :  { %2621 = vmatmul.mubr.msk.f32.vlgmr.msra.gmra.mrb[6].mxu1 %vm1045_vm1, %v2265_v45  ;;  %v1700_v53 = vmul.f32 %v3120_v39, %v1691_v37 }
 0x238   :  { %2784 = vmatpush3.bf16.msra.mxu1 %v2781_v31  ;;  %2623 = vmatprep.mubr.msk.f32.mxu1 %vm1045_vm1, %v2266_v36 }
 0x239   :  { %2786 = vmatprep.subr.bf16.mxu1 %v2785_v38  ;;  %v1697_v42 = vpop.permute.xlu0 %1696  ;;  %v2797_v58 = vpack.c.bf16 %v1701_v52, %v1700_v53  ;;  %v2312_v53 = vld [vmem:[%s3569_s7] ss:$0 sm:$0xff] }
 0x23a   :  { %v1695_v43 = vpop.permute.xlu1 %1694  ;;  %v1703_v59 = vmul.f32 %v3120_v39, %v1697_v42 }
 0x23b   :  { %2624 = vmatmul.mubr.msk.f32.gmra.mrb[8].mxu1 %vm1045_vm1, %v2267_v49  ;;  %v1702_v10 = vmul.f32 %v3120_v39, %v1695_v43 }
 0x23c   :  { %2788 = vmatpush3.bf16.msra.mxu1 %v2785_v38  ;;  %2626 = vmatprep.mubr.msk.f32.mxu1 %vm1045_vm1, %v2268_v41 }
 0x23d   :  { %2790 = vmatprep.subr.bf16.mxu1 %v2789_v44  ;;  %v1833_v54 = vpop.permute.xlu0 %1832  ;;  %v2801_v0 = vpack.c.bf16 %v1703_v59, %v1702_v10 }
 0x23e   :  { %v1831_v55 = vpop.permute.xlu1 %1830  ;;  %v1843_v1 = vmul.f32 %v3150_v48, %v1833_v54 }
 0x23f   :  { %2627 = vmatmul.mubr.msk.f32.gmra.mrb[10].mxu1 %vm1045_vm1, %v2269_v47  ;;  %v1842_v39 = vmul.f32 %v3150_v48, %v1831_v55 }
 0x240   :  { %2792 = vmatpush3.bf16.msra.mxu1 %v2789_v44  ;;  %2641 = vmatprep.mubr.msk.f32.mxu1 %vm1045_vm1, %v2276_v50 }
 0x241   :  { %2794 = vmatprep.subr.bf16.mxu1 %v2793_v51  ;;  %v1837_v62 = vpop.permute.xlu0 %1836  ;;  %v2805_v4 = vpack.c.bf16 %v1843_v1, %v1842_v39 }
 0x242   :  { %v1835_v63 = vpop.permute.xlu1 %1834  ;;  %v1845_v5 = vmul.f32 %v3150_v48, %v1837_v62 }
 0x243   :  { %2642 = vmatmul.mubr.msk.f32.vlgmr.msra.gmra.mrb[6].mxu1 %vm1045_vm1, %v2277_v56  ;;  %v1844_v6 = vmul.f32 %v3150_v48, %v1835_v63 }
 0x244   :  { %2796 = vmatpush3.bf16.msra.mxu1 %v2793_v51  ;;  %2644 = vmatprep.mubr.msk.f32.mxu1 %vm1045_vm1, %v2278_v57 }
 0x245   :  { %2798 = vmatprep.subr.bf16.mxu1 %v2797_v58  ;;  %v1841_v7 = vpop.permute.xlu0 %1840  ;;  %v2809_v12 = vpack.c.bf16 %v1845_v5, %v1844_v6 }
 0x246   :  { %v1839_v8 = vpop.permute.xlu1 %1838  ;;  %v1847_v14 = vmul.f32 %v3150_v48, %v1841_v7 }
 0x247   :  { %2645 = vmatmul.mubr.msk.f32.gmra.mrb[8].mxu1 %vm1045_vm1, %v2279_v60  ;;  %v1846_v15 = vmul.f32 %v3150_v48, %v1839_v8  ;;  %v2293_v48 = vld [vmem:[%s3566_s4 + $0x118] sm:$0xff] }
 0x248   :  { %2800 = vmatpush3.bf16.msra.mxu1 %v2797_v58  ;;  %2647 = vmatprep.mubr.msk.f32.mxu1 %vm1045_vm1, %v2280_v61 }
 0x249   :  { %2802 = vmatprep.subr.bf16.mxu1 %v2801_v0  ;;  %v2813_v17 = vpack.c.bf16 %v1847_v14, %v1846_v15 }
 0x24b   :  { %2648 = vmatmul.mubr.msk.f32.gmra.mrb[10].mxu1 %vm1045_vm1, %v2281_v2 }
 0x24c   :  { %2804 = vmatpush3.bf16.msra.mxu1 %v2801_v0  ;;  %2662 = vmatprep.mubr.msk.f32.mxu1 %vm1045_vm1, %v2288_v3 }
 0x24d   :  { %2806 = vmatprep.subr.bf16.mxu1 %v2805_v4 }
 0x24f   :  { %2663 = vmatmul.mubr.msk.f32.vlgmr.msra.gmra.mrb[6].mxu1 %vm1045_vm1, %v2289_v9 }
 0x250   :  { %2808 = vmatpush3.bf16.msra.mxu1 %v2805_v4  ;;  %2665 = vmatprep.mubr.msk.f32.mxu1 %vm1045_vm1, %v2290_v11 }
 0x251   :  { %2810 = vmatprep.subr.bf16.mxu1 %v2809_v12 }
 0x253   :  { %2666 = vmatmul.mubr.msk.f32.gmra.mrb[8].mxu1 %vm1045_vm1, %v2291_v16 }
 0x254   :  { %2812 = vmatpush3.bf16.msra.mxu1 %v2809_v12  ;;  %2668 = vmatprep.mubr.msk.f32.mxu1 %vm1045_vm1, %v2292_v13 }
 0x255   :  { %2814 = vmatprep.subr.bf16.mxu1 %v2813_v17 }
 0x256   :  { %v1988_v28 = vpop.permute.xlu0 %1987 }
 0x257   :  { %2669 = vmatmul.mubr.msk.f32.gmra.mrb[10].mxu1 %vm1045_vm1, %v2293_v48  ;;  %v1983_v29 = vpop.permute.xlu1 %1982 }
 0x258   :  { %2816 = vmatpush3.bf16.msra.mxu1 %v2813_v17  ;;  %2683 = vmatprep.mubr.msk.f32.mxu1 %vm1045_vm1, %v2300_v18 }
 0x25a   :  { %v1998_v34 = vpop.permute.xlu0 %1997 }
 0x25b   :  { %2684 = vmatmul.mubr.msk.f32.vlgmr.msra.gmra.mrb[6].mxu1 %vm1045_vm1, %v2301_v20  ;;  %v1993_v35 = vpop.permute.xlu1 %1992 }
 0x25c   :  { %2686 = vmatprep.mubr.msk.f32.mxu1 %vm1045_vm1, %v2302_v21 }
 0x25e   :  { %v2008_v41 = vpop.permute.xlu0 %2007 }
 0x25f   :  { %2687 = vmatmul.mubr.msk.f32.gmra.mrb[8].mxu1 %vm1045_vm1, %v2303_v22  ;;  %v2003_v44 = vpop.permute.xlu1 %2002 }
 0x260   :  { %2689 = vmatprep.mubr.msk.f32.mxu1 %vm1045_vm1, %v2304_v23 }
 0x263   :  { %2690 = vmatmul.mubr.msk.f32.gmra.mrb[10].mxu1 %vm1045_vm1, %v2305_v24 }
 0x32e   :  { %v2685_v30 = vpop.f32.mrb[6].mxu1 }
 0x32f   :  { %v2011_v31 = vadd.f32 %v2685_v30, %v1988_v28  ;;  %v1939_v32 = vpop.f32.mrb[7].mxu1 }
 0x330   :  { %v2010_v45 = vadd.f32 %v1983_v29, %v1939_v32 }
 0x331   :  { %v2017_v38 = vmax.f32 %v2011_v31, 0.0 }
 0x332   :  { %v2016_v36 = vmax.f32 %v2010_v45, 0.0  ;;  %v2688_v37 = vpop.f32.mrb[8].mxu1 }
 0x333   :  { %v2013_v40 = vadd.f32 %v2688_v37, %v1998_v34  ;;  %v1949_v19 = vpop.f32.mrb[9].mxu1 }
 0x334   :  { %v2012_v49 = vadd.f32 %v1993_v35, %v1949_v19  ;;  %2724 = vmatprep.mubr.f32.mxu0 %v2016_v36 }
 0x335   :  { %2725 = vmatmul.mubr.f32.vlgmr.msra.gmra.mrb[6].mxu0 %v2017_v38  ;;  %v2019_v46 = vmax.f32 %v2013_v40, 0.0 }
 0x336   :  { %v2018_v42 = vmax.f32 %v2012_v49, 0.0  ;;  %v2691_v43 = vpop.f32.mrb[10].mxu1 }
 0x337   :  { %v2015_v27 = vadd.f32 %v2691_v43, %v2008_v41  ;;  %v1959_v47 = vpop.f32.mrb[11].mxu1 }
 0x338   :  { %v2014_v50 = vadd.f32 %v2003_v44, %v1959_v47  ;;  %2727 = vmatprep.mubr.f32.mxu0 %v2018_v42 }
 0x339   :  { %2728 = vmatmul.mubr.f32.gmra.mrb[8].mxu0 %v2019_v46  ;;  %v2021_v52 = vmax.f32 %v2015_v27, 0.0 }
 0x33a   :  { %v2020_v51 = vmax.f32 %v2014_v50, 0.0 }
 0x33c   :  { %2730 = vmatprep.mubr.f32.mxu0 %v2020_v51 }
 0x33d   :  { %2731 = vmatmul.mubr.f32.gmra.mrb[10].mxu0 %v2021_v52 }
 0x408   :  { %v2726_v54 = vpop.f32.mrb[6].mxu0 }
 0x409   :  { %v2117_v55 = vadd.f32 %v2726_v54, %v2312_v53  ;;  %v2111_v56 = vpop.f32.mrb[7].mxu0 }
 0x40a   :  { %v2112_v57 = vadd.f32 %v2312_v53, %v2111_v56 }
 0x40b   :  { %2141 = vst [vmem:[%s3570_s8 + $0x8] sm:$0xff] %v2117_v55 }
 0x40c   :  { %2140 = vst [vmem:[%s3570_s8] sm:$0xff] %v2112_v57  ;;  %v2729_v58 = vpop.f32.mrb[8].mxu0 }
 0x40d   :  { %v2127_v59 = vadd.f32 %v2729_v58, %v2312_v53  ;;  %v2121_v10 = vpop.f32.mrb[9].mxu0 }
 0x40e   :  { %v2122_v60 = vadd.f32 %v2312_v53, %v2121_v10 }
 0x40f   :  { %2143 = vst [vmem:[%s3570_s8 + $0x18] sm:$0xff] %v2127_v59 }
 0x410   :  { %2142 = vst [vmem:[%s3570_s8 + $0x10] sm:$0xff] %v2122_v60  ;;  %v2732_v61 = vpop.f32.mrb[10].mxu0 }
 0x411   :  { %v2137_v62 = vadd.f32 %v2732_v61, %v2312_v53  ;;  %v2131_v63 = vpop.f32.mrb[11].mxu0 }
 0x412   :  { %v2132_v0 = vadd.f32 %v2312_v53, %v2131_v63 }
 0x413   :  { %2145 = vst [vmem:[%s3570_s8 + $0x28] sm:$0xff] %v2137_v62 }
 0x414   :  { %2144 = vst [vmem:[%s3570_s8 + $0x20] sm:$0xff] %v2132_v0 }

</bundles_post_ra>
